<compile_context>
chip_gen: v7x
topology: tpu7x:2x2x1
jax: 0.10.0
libtpu: 0.0.40
codegen_flags: <defaults>
</compile_context>

<pallas_src>
import jax
import jax.numpy as jnp
from jax.experimental import pallas as pl
from jax.experimental.pallas import tpu as pltpu

_MIN_CHUNK_BYTES = 1 << 20  # don't split below ~1 MiB per DMA chunk


def _make_dma_identity_kernel(n_chunks: int):
    """HBM -> HBM copy: issue every chunk DMA, then wait on all of them."""

    def kernel(x_hbm, o_hbm, sems):
        copies = [
            pltpu.make_async_copy(x_hbm.at[i], o_hbm.at[i], sems.at[i])
            for i in range(n_chunks)
        ]
        for cp in copies:
            cp.start()
        for cp in copies:
            cp.wait()

    return kernel


def _alias_noop_kernel(x_hbm, o_hbm):
    # Output buffer aliases the input buffer: nothing to do (zero bytes moved).
    del x_hbm, o_hbm


def _pick_chunks(n: int, itemsize: int) -> int:
    """Few concurrent DMAs for big copies, a single DMA otherwise."""
    for c in (8, 4, 2):
        if n % c == 0 and (n // c) * itemsize >= _MIN_CHUNK_BYTES:
            return c
    return 1


def equal_layer(x: jnp.ndarray, *, alias: bool = False) -> jnp.ndarray:
    """Identity forward pass of EqualLayer (PyTorch: `return x`)."""
    if x.size == 0:
        return x

    if alias:
        # Zero-copy identity: output aliases the input buffer.  For this to be
        # truly free the caller must donate `x` (jax.jit donate_argnums);
        # otherwise XLA inserts one defensive copy and the result is still
        # correct.
        return pl.pallas_call(
            _alias_noop_kernel,
            out_shape=jax.ShapeDtypeStruct(x.shape, x.dtype),
            in_specs=[pl.BlockSpec(memory_space=pl.ANY)],
            out_specs=pl.BlockSpec(memory_space=pl.ANY),
            input_output_aliases={0: 0},
        )(x)

    n = x.size
    itemsize = jnp.dtype(x.dtype).itemsize
    n_chunks = _pick_chunks(n, itemsize)
    # Contiguous metadata-only reshape; no padding needed for any element count.
    x2d = x.reshape(n_chunks, n // n_chunks)

    out2d = pl.pallas_call(
        _make_dma_identity_kernel(n_chunks),
        out_shape=jax.ShapeDtypeStruct(x2d.shape, x2d.dtype),
        in_specs=[pl.BlockSpec(memory_space=pl.ANY)],
        out_specs=pl.BlockSpec(memory_space=pl.ANY),
        scratch_shapes=[pltpu.SemaphoreType.DMA((n_chunks,))],
    )(x2d)
    return out2d.reshape(x.shape)


if __name__ == "__main__":
    key = jax.random.PRNGKey(0)

    # NCHW-style input: batch=2, channels=4, spatial=16x16.
    x = jax.random.normal(key, (2, 4, 16, 16), dtype=jnp.float32)
    y = equal_layer(x)
    jax.block_until_ready(y)
    assert y.shape == x.shape and y.dtype == x.dtype
    assert bool(jnp.all(y == x))

    # Awkward element count (3*5*7 = 105, not a multiple of 128): exercises the
    # pad-free byte-granular DMA path that replaced the old concat/slice fallback.
    x_odd = jax.random.normal(jax.random.PRNGKey(0), (3, 5, 7), dtype=jnp.float32)
    y_odd = equal_layer(x_odd)
    jax.block_until_ready(y_odd)
    assert y_odd.shape == x_odd.shape and y_odd.dtype == x_odd.dtype
    assert bool(jnp.all(y_odd == x_odd))

    print("KERNEL_OK")
</pallas_src>

<mosaic_0001>
module attributes {stable_mosaic.version = 11 : i64} {
  func.func @kernel(%arg0: memref<1x2048xf32, #tpu.memory_space<any>>, %arg1: memref<1x2048xf32, #tpu.memory_space<any>>, %arg2: memref<1x!tpu.dma_semaphore, #tpu.memory_space<semaphore_mem>>) attributes {dimension_semantics = [], scalar_prefetch = 0 : i64, scratch_operands = 1 : i64, tpu.core_type = #tpu.core_type<tc>} {
    %c0_i32 = arith.constant 0 : i32
    %c0_i32_0 = arith.constant 0 : i32
    %c0_i32_1 = arith.constant 0 : i32
    %c0_i32_2 = arith.constant 0 : i32
    %0 = tpu.memref_slice %arg0[%c0_i32, %c0_i32_2] : memref<1x2048xf32, #tpu.memory_space<any>> -> memref<1x2048xf32, #tpu.memory_space<any>>
    %1 = tpu.memref_squeeze %0 : memref<1x2048xf32, #tpu.memory_space<any>> -> memref<2048xf32, #tpu.memory_space<any>>
    %c0_i32_3 = arith.constant 0 : i32
    %2 = tpu.memref_slice %arg1[%c0_i32_0, %c0_i32_3] : memref<1x2048xf32, #tpu.memory_space<any>> -> memref<1x2048xf32, #tpu.memory_space<any>>
    %3 = tpu.memref_squeeze %2 : memref<1x2048xf32, #tpu.memory_space<any>> -> memref<2048xf32, #tpu.memory_space<any>>
    %4 = tpu.memref_slice %arg2[%c0_i32_1] : memref<1x!tpu.dma_semaphore, #tpu.memory_space<semaphore_mem>> -> memref<1x!tpu.dma_semaphore, #tpu.memory_space<semaphore_mem>>
    %5 = tpu.memref_squeeze %4 : memref<1x!tpu.dma_semaphore, #tpu.memory_space<semaphore_mem>> -> memref<!tpu.dma_semaphore, #tpu.memory_space<semaphore_mem>>
    tpu.enqueue_dma source(%1 : memref<2048xf32, #tpu.memory_space<any>>) target(%3 : memref<2048xf32, #tpu.memory_space<any>>) target_semaphore(%5 : memref<!tpu.dma_semaphore, #tpu.memory_space<semaphore_mem>>)
    %c0_i32_4 = arith.constant 0 : i32
    %c0_i32_5 = arith.constant 0 : i32
    %c0_i32_6 = arith.constant 0 : i32
    %c0_i32_7 = arith.constant 0 : i32
    %6 = tpu.memref_slice %arg0[%c0_i32_4, %c0_i32_7] : memref<1x2048xf32, #tpu.memory_space<any>> -> memref<1x2048xf32, #tpu.memory_space<any>>
    %7 = tpu.memref_squeeze %6 : memref<1x2048xf32, #tpu.memory_space<any>> -> memref<2048xf32, #tpu.memory_space<any>>
    %c0_i32_8 = arith.constant 0 : i32
    %8 = tpu.memref_slice %arg1[%c0_i32_5, %c0_i32_8] : memref<1x2048xf32, #tpu.memory_space<any>> -> memref<1x2048xf32, #tpu.memory_space<any>>
    %9 = tpu.memref_squeeze %8 : memref<1x2048xf32, #tpu.memory_space<any>> -> memref<2048xf32, #tpu.memory_space<any>>
    %10 = tpu.memref_slice %arg2[%c0_i32_6] : memref<1x!tpu.dma_semaphore, #tpu.memory_space<semaphore_mem>> -> memref<1x!tpu.dma_semaphore, #tpu.memory_space<semaphore_mem>>
    %11 = tpu.memref_squeeze %10 : memref<1x!tpu.dma_semaphore, #tpu.memory_space<semaphore_mem>> -> memref<!tpu.dma_semaphore, #tpu.memory_space<semaphore_mem>>
    tpu.wait_dma2 semaphore(%11 : memref<!tpu.dma_semaphore, #tpu.memory_space<semaphore_mem>>) src(%7 : memref<2048xf32, #tpu.memory_space<any>>) dst(%9 : memref<2048xf32, #tpu.memory_space<any>>)
    return
  }
}

</mosaic_0001>

<bundles_post_ra>
// kernel: tpu_custom_call.1
= control target key start
LH: loop header
LB: loop body
LE: loop exit
PB: predicated region body
PF: predicated region fallthrough
CT: control target
= control target key end

     0   :  { %s33_s6 = smov [#allocation2]   ;;  %s34_s7 = smov [#allocation3]   ;;  %s52_s0 = inlined_call_operand.hbm [shape: f32[1,2048], index: 0, kind: input, shape index: {}]   ;;  %s53_s1 = inlined_call_operand.hbm [shape: f32[1,2048], index: 1, kind: output, shape index: {}]  }
   0x1   :  { %s35_s8 = smov 0  }
   0x2   :  { %18 = dma.general %s52_s0, 256, %s53_s1, %s33_s6, %s34_s7, [#allocation4], %s35_s8, 0  }
   0x3   :  { %31 = dma.done.wait [#allocation2], 256 }
   0x4   :  { %32 = vsyncadd [#allocation2], 4294967040 }
   0x5   :  { %21 = vsyncmov [#allocation2] }
   0x8   :  { %s22_s13 = vpop.sfrf %21 }
   0x9   :  { %p27_p0 = scmp.ne.s32.totalorder %s22_s13, 0 }
   0xb   :  { %26 = shalt.err (%p27_p0)  }

</bundles_post_ra>
